<compile_context>
chip_gen: v7x
topology: tpu7x:2x2x1
jax: 0.10.0
libtpu: 0.0.40
codegen_flags: <defaults>
</compile_context>

<pallas_src>
import functools

import jax
import jax.numpy as jnp
import numpy as np
from jax.experimental import pallas as pl
from jax.experimental.pallas import tpu as pltpu

BN_EPS = 1e-5


def _embedding_net_kernel(xa_ref, w1_ref, w2_ref, w3_ref, wr_ref, vec_ref,
                          act_ref, scal_ref, *, dims, lambda_):
  d0, d1, dx, da = dims
  h0 = d0 * 5
  lam0, lam1, lam2, lam3 = lambda_
  n = xa_ref.shape[0]

  xa = xa_ref[...]                                   # (N, dx+da) = [x | a]

  # Vector-parameter slab rows (see _pack_inputs for the layout).
  b3 = vec_ref[0:1, :2 * d1]                         # [b13 | b23]
  brec = vec_ref[1:2, :dx + da]                      # [b14 | b24]
  g1 = vec_ref[2:3, :2 * d0]
  be1 = vec_ref[3:4, :2 * d0]
  g3 = vec_ref[4:5, :2 * h0]
  be3 = vec_ref[5:6, :2 * h0]
  g2 = vec_ref[6:7, :2 * d1]
  be2 = vec_ref[7:8, :2 * d1]

  def bn(v, g, b):
    # Training-mode BatchNorm1d: per-column batch mean / biased batch variance.
    mu = jnp.mean(v, axis=0, keepdims=True)
    var = jnp.mean((v - mu) ** 2, axis=0, keepdims=True)
    return g * (v - mu) * jax.lax.rsqrt(var + BN_EPS) + b

  # ---- transform(): both branches fused via block-diagonal weights ----
  # Linear biases before training-mode BN are omitted (cancelled by the mean).
  h = jnp.maximum(
      bn(jnp.dot(xa, w1_ref[...], preferred_element_type=jnp.float32), g1, be1),
      0.0)
  h = jnp.maximum(
      bn(jnp.dot(h, w2_ref[...], preferred_element_type=jnp.float32), g3, be3),
      0.0)
  z = jnp.dot(h, w3_ref[...], preferred_element_type=jnp.float32) + b3  # [z1|z2]

  # ---- reconstruction(): one fused matmul -> [x_hat | a_logits] ----
  rec = jnp.dot(z, wr_ref[...], preferred_element_type=jnp.float32) + brec
  col = jax.lax.broadcasted_iota(jnp.int32, rec.shape, 1)
  is_x = col < dx
  sig = pl.reciprocal(1.0 + jnp.exp(-rec), approx=True)       # EUP slot
  out = jnp.where(is_x, rec, sig)                             # [x_hat | a_hat]

  # ---- compute_loss(): R1/R2 from a single masked reduction pass ----
  err2 = (xa - out) ** 2
  x_err = jnp.sum(jnp.where(is_x, err2, 0.0), keepdims=True)  # (1,1)
  a_err = jnp.sum(err2, keepdims=True) - x_err
  r2 = (lam1 / float(n * dx)) * x_err
  r1 = (lam0 / float(n * da)) * a_err

  # ---- compability_loss(): cross-correlation of bn2-normalised embeddings ----
  zn = bn(z, g2, be2)                                  # [bn2(z1) | bn2(z2)]
  c = jax.lax.dot_general(zn[:, :d1], zn[:, d1:2 * d1],
                          (((0,), (0,)), ((), ())),
                          preferred_element_type=jnp.float32) / float(n)
  rows = jax.lax.broadcasted_iota(jnp.int32, (d1, d1), 0)
  cols = jax.lax.broadcasted_iota(jnp.int32, (d1, d1), 1)
  diag_c = jnp.where(rows == cols, c, 0.0)             # single mask pass
  diag_sum = jnp.sum(diag_c, keepdims=True)
  diag_sq = jnp.sum(diag_c * diag_c, keepdims=True)
  total_sq = jnp.sum(c * c, keepdims=True)
  on_diag = diag_sq - 2.0 * diag_sum + float(d1)       # sum((diag(c)-1)^2)
  off_diag = total_sq - diag_sq
  cm = lam2 * (on_diag + lam3 * off_diag)
  total = r1 + r2 + cm

  # ---- lane-dense packed outputs (one unmasked store + one tiny store) ----
  pad = act_ref.shape[1] - (2 * d1 + dx + da)
  parts = [z, out]
  if pad:
    parts.append(jnp.zeros((n, pad), jnp.float32))
  act_ref[...] = jnp.concatenate(parts, axis=1)
  scal_ref[...] = jnp.concatenate([r1, r2, cm, total], axis=1)


def _pack_inputs(x, a, p, d0, d1):
  """Pack inputs/params into a handful of lane-dense slabs (fewer DMAs)."""
  dx, da = x.shape[1], a.shape[1]
  h0 = d0 * 5
  f32 = jnp.float32

  def blkdiag(wa, wb):
    ra, ca = wa.shape
    rb, cb = wb.shape
    return jnp.concatenate([
        jnp.concatenate([wa, jnp.zeros((ra, cb), f32)], axis=1),
        jnp.concatenate([jnp.zeros((rb, ca), f32), wb], axis=1)], axis=0)

  xa = jnp.concatenate([x, a], axis=1)                        # (N, dx+da)
  w1 = blkdiag(p["w11"], p["w21"])                            # (dx+da, 2*d0)
  w2 = blkdiag(p["w12"], p["w22"])                            # (2*d0, 2*h0)
  w3 = blkdiag(p["w13"], p["w23"])                            # (2*h0, 2*d1)
  # reconstruction: [z1|z2] @ [[w14a | w24b], [w14b | w24a]] + [b14 | b24]
  wr = jnp.concatenate([
      jnp.concatenate([p["w14a"], p["w24b"]], axis=1),
      jnp.concatenate([p["w14b"], p["w24a"]], axis=1)], axis=0)  # (2*d1, dx+da)

  vec_w = max(2 * h0, 2 * d0, 2 * d1, dx + da)

  def row(v):
    v = v.reshape(1, -1)
    return jnp.pad(v, ((0, 0), (0, vec_w - v.shape[1])))

  vec = jnp.concatenate([
      row(jnp.concatenate([p["b13"], p["b23"]], axis=1)),
      row(jnp.concatenate([p["b14"], p["b24"]], axis=1)),
      row(jnp.tile(p["g1"], (1, 2))),
      row(jnp.tile(p["be1"], (1, 2))),
      row(jnp.tile(p["g3"], (1, 2))),
      row(jnp.tile(p["be3"], (1, 2))),
      row(jnp.tile(p["g2"], (1, 2))),
      row(jnp.tile(p["be2"], (1, 2))),
  ], axis=0)                                                  # (8, vec_w)
  return xa, w1, w2, w3, wr, vec


def embedding_net_forward(x, a, params, lambda_):
  n, dx = x.shape
  da = a.shape[1]
  d0 = params["w11"].shape[1]
  d1 = params["w13"].shape[1]

  xa, w1, w2, w3, wr, vec = _pack_inputs(x, a, params, d0, d1)
  inputs = (xa, w1, w2, w3, wr, vec)

  act_cols = 2 * d1 + dx + da
  act_width = max(256, ((act_cols + 127) // 128) * 128)       # lane-dense slab

  flops = 2 * n * (w1.shape[0] * w1.shape[1] + w2.shape[0] * w2.shape[1]
                   + w3.shape[0] * w3.shape[1] + wr.shape[0] * wr.shape[1]
                   + d1 * d1)
  bytes_accessed = 4 * (sum(int(np.prod(t.shape)) for t in inputs)
                        + n * act_width + 4)
  cost = pl.CostEstimate(flops=int(flops),
                         transcendentals=int(n * (dx + da)),
                         bytes_accessed=int(bytes_accessed))

  vmem = pl.BlockSpec(memory_space=pltpu.MemorySpace.VMEM)
  out_shape = (
      jax.ShapeDtypeStruct((n, act_width), jnp.float32),      # [z1|z2|x_|a_|0]
      jax.ShapeDtypeStruct((1, 4), jnp.float32),              # [r1,r2,cm,loss]
  )

  act, scal = pl.pallas_call(
      functools.partial(_embedding_net_kernel,
                        dims=(d0, d1, dx, da),
                        lambda_=tuple(float(v) for v in lambda_)),
      out_shape=out_shape,
      in_specs=[vmem] * len(inputs),
      out_specs=(vmem, vmem),
      cost_estimate=cost,
  )(*inputs)

  z1 = act[:, :d1]
  z2 = act[:, d1:2 * d1]
  x_ = act[:, 2 * d1:2 * d1 + dx]
  a_ = act[:, 2 * d1 + dx:act_cols]
  return {"z1": z1, "z2": z2, "x": x, "x_": x_, "a_": a_,
          "r1": scal[0, 0], "r2": scal[0, 1], "cm": scal[0, 2],
          "loss": scal[0, 3]}


def init_params(key, dim):
  d0, d1 = dim
  keys = jax.random.split(key, 8)

  def lin(k, fin, fout):
    kw, kb = jax.random.split(k)
    bound = 1.0 / float(np.sqrt(fin))
    w = jax.random.uniform(kw, (fin, fout), jnp.float32, -bound, bound)
    b = jax.random.uniform(kb, (1, fout), jnp.float32, -bound, bound)
    return w, b

  w11, b11 = lin(keys[0], 52, d0)
  w12, b12 = lin(keys[1], d0, d0 * 5)
  w13, b13 = lin(keys[2], d0 * 5, d1)
  w14, b14 = lin(keys[3], 2 * d1, 52)
  w21, b21 = lin(keys[4], 20, d0)
  w22, b22 = lin(keys[5], d0, d0 * 5)
  w23, b23 = lin(keys[6], d0 * 5, d1)
  w24, b24 = lin(keys[7], 2 * d1, 20)
  return dict(
      w11=w11, b11=b11, w12=w12, b12=b12, w13=w13, b13=b13,
      w14a=w14[:d1], w14b=w14[d1:], b14=b14,
      w21=w21, b21=b21, w22=w22, b22=b22, w23=w23, b23=b23,
      w24a=w24[:d1], w24b=w24[d1:], b24=b24,
      g1=jnp.ones((1, d0), jnp.float32), be1=jnp.zeros((1, d0), jnp.float32),
      g3=jnp.ones((1, d0 * 5), jnp.float32), be3=jnp.zeros((1, d0 * 5), jnp.float32),
      g2=jnp.ones((1, d1), jnp.float32), be2=jnp.zeros((1, d1), jnp.float32),
  )


def reference_forward(x, a, params, lambda_):
  """Pure-JAX reference mirroring the PyTorch module (training-mode BN)."""
  p = params
  lam0, lam1, lam2, lam3 = lambda_

  def bn(v, g, b):
    mu = v.mean(0, keepdims=True)
    var = ((v - mu) ** 2).mean(0, keepdims=True)
    return g * (v - mu) / jnp.sqrt(var + BN_EPS) + b

  h1 = jax.nn.relu(bn(x @ p["w11"] + p["b11"], p["g1"], p["be1"]))
  h1 = jax.nn.relu(bn(h1 @ p["w12"] + p["b12"], p["g3"], p["be3"]))
  z1 = h1 @ p["w13"] + p["b13"]
  h2 = jax.nn.relu(bn(a @ p["w21"] + p["b21"], p["g1"], p["be1"]))
  h2 = jax.nn.relu(bn(h2 @ p["w22"] + p["b22"], p["g3"], p["be3"]))
  z2 = h2 @ p["w23"] + p["b23"]
  x_ = z1 @ p["w14a"] + z2 @ p["w14b"] + p["b14"]
  a_ = 1.0 / (1.0 + jnp.exp(-(z2 @ p["w24a"] + z1 @ p["w24b"] + p["b24"])))
  z1n, z2n = bn(z1, p["g2"], p["be2"]), bn(z2, p["g2"], p["be2"])
  c = z1n.T @ z2n / x.shape[0]
  on_diag = jnp.sum((jnp.diag(c) - 1.0) ** 2)
  off_diag = jnp.sum(c ** 2) - jnp.sum(jnp.diag(c) ** 2)
  r1 = lam0 * jnp.mean((a - a_) ** 2)
  r2 = lam1 * jnp.mean((x - x_) ** 2)
  cm = lam2 * (on_diag + lam3 * off_diag)
  return {"z1": z1, "z2": z2, "x": x, "x_": x_, "a_": a_,
          "r1": r1, "r2": r2, "cm": cm, "loss": r1 + r2 + cm}


if __name__ == "__main__":
  key = jax.random.PRNGKey(0)
  kx, ka, kp = jax.random.split(key, 3)

  N = 8                       # batch
  dim = (32, 32)              # (dim[0], dim[1]) from the module __init__
  lambda_ = (1.0, 1.0, 1.0, 0.0051)

  x = jax.random.normal(kx, (N, 52), jnp.float32)                   # expression
  a = (jax.random.uniform(ka, (N, 20)) > 0.5).astype(jnp.float32)   # attributes

  params = init_params(kp, dim)

  out = embedding_net_forward(x, a, params, lambda_)
  jax.block_until_ready(out)

  ref = reference_forward(x, a, params, lambda_)
  for k in ("z1", "z2", "x_", "a_", "r1", "r2", "cm", "loss"):
    np.testing.assert_allclose(np.asarray(out[k]), np.asarray(ref[k]),
                               rtol=5e-3, atol=5e-3)

  print("KERNEL_OK")
</pallas_src>

<mosaic_0001>
module attributes {stable_mosaic.version = 11 : i64} {
  func.func @_embedding_net_kernel(%arg0: memref<8x72xf32, #tpu.memory_space<vmem>>, %arg1: memref<72x64xf32, #tpu.memory_space<vmem>>, %arg2: memref<64x320xf32, #tpu.memory_space<vmem>>, %arg3: memref<320x64xf32, #tpu.memory_space<vmem>>, %arg4: memref<64x72xf32, #tpu.memory_space<vmem>>, %arg5: memref<8x320xf32, #tpu.memory_space<vmem>>, %arg6: memref<8x256xf32, #tpu.memory_space<vmem>>, %arg7: memref<1x4xf32, #tpu.memory_space<vmem>>) attributes {dimension_semantics = [], scalar_prefetch = 0 : i64, scratch_operands = 0 : i64, tpu.core_type = #tpu.core_type<tc>} {
    %c0 = arith.constant 0 : index
    %c0_0 = arith.constant 0 : index
    %0 = vector.load %arg0[%c0, %c0_0] : memref<8x72xf32, #tpu.memory_space<vmem>>, vector<8x72xf32>
    %c0_1 = arith.constant 0 : index
    %c0_2 = arith.constant 0 : index
    %1 = vector.load %arg5[%c0_1, %c0_2] : memref<8x320xf32, #tpu.memory_space<vmem>>, vector<1x64xf32>
    %c1 = arith.constant 1 : index
    %c0_3 = arith.constant 0 : index
    %2 = vector.load %arg5[%c1, %c0_3] : memref<8x320xf32, #tpu.memory_space<vmem>>, vector<1x72xf32>
    %c2 = arith.constant 2 : index
    %c0_4 = arith.constant 0 : index
    %3 = vector.load %arg5[%c2, %c0_4] : memref<8x320xf32, #tpu.memory_space<vmem>>, vector<1x64xf32>
    %c3 = arith.constant 3 : index
    %c0_5 = arith.constant 0 : index
    %4 = vector.load %arg5[%c3, %c0_5] : memref<8x320xf32, #tpu.memory_space<vmem>>, vector<1x64xf32>
    %c4 = arith.constant 4 : index
    %c0_6 = arith.constant 0 : index
    %5 = vector.load %arg5[%c4, %c0_6] : memref<8x320xf32, #tpu.memory_space<vmem>>, vector<1x320xf32>
    %c5 = arith.constant 5 : index
    %c0_7 = arith.constant 0 : index
    %6 = vector.load %arg5[%c5, %c0_7] : memref<8x320xf32, #tpu.memory_space<vmem>>, vector<1x320xf32>
    %c6 = arith.constant 6 : index
    %c0_8 = arith.constant 0 : index
    %7 = vector.load %arg5[%c6, %c0_8] : memref<8x320xf32, #tpu.memory_space<vmem>>, vector<1x64xf32>
    %c7 = arith.constant 7 : index
    %c0_9 = arith.constant 0 : index
    %8 = vector.load %arg5[%c7, %c0_9] : memref<8x320xf32, #tpu.memory_space<vmem>>, vector<1x64xf32>
    %c0_10 = arith.constant 0 : index
    %c0_11 = arith.constant 0 : index
    %9 = vector.load %arg1[%c0_10, %c0_11] : memref<72x64xf32, #tpu.memory_space<vmem>>, vector<72x64xf32>
    %cst = arith.constant dense<0.000000e+00> : vector<8x64xf32>
    %10 = tpu.matmul %0, %9, %cst {dimension_numbers = #tpu.dot_dimension_numbers<[1], [0], [0], [1], [0, 0, 1, 1], [], []>} : vector<8x72xf32>, vector<72x64xf32>, vector<8x64xf32> -> vector<8x64xf32>
    %cst_12 = arith.constant dense<0.000000e+00> : vector<64xf32>
    %11 = vector.multi_reduction <add>, %10, %cst_12 [0] : vector<8x64xf32> to vector<64xf32>
    %12 = vector.shape_cast %11 : vector<64xf32> to vector<1x64xf32>
    %cst_13 = arith.constant 8.000000e+00 : f32
    %13 = vector.broadcast %cst_13 : f32 to vector<1x64xf32>
    %14 = arith.divf %12, %13 : vector<1x64xf32>
    %15 = vector.broadcast %14 : vector<1x64xf32> to vector<8x64xf32>
    %16 = arith.subf %10, %15 : vector<8x64xf32>
    %17 = arith.mulf %16, %16 : vector<8x64xf32>
    %cst_14 = arith.constant dense<0.000000e+00> : vector<64xf32>
    %18 = vector.multi_reduction <add>, %17, %cst_14 [0] : vector<8x64xf32> to vector<64xf32>
    %19 = vector.shape_cast %18 : vector<64xf32> to vector<1x64xf32>
    %cst_15 = arith.constant 8.000000e+00 : f32
    %20 = vector.broadcast %cst_15 : f32 to vector<1x64xf32>
    %21 = arith.divf %19, %20 : vector<1x64xf32>
    %22 = vector.broadcast %14 : vector<1x64xf32> to vector<8x64xf32>
    %23 = arith.subf %10, %22 : vector<8x64xf32>
    %24 = vector.broadcast %3 : vector<1x64xf32> to vector<8x64xf32>
    %25 = arith.mulf %24, %23 : vector<8x64xf32>
    %cst_16 = arith.constant 9.99999974E-6 : f32
    %26 = vector.broadcast %cst_16 : f32 to vector<1x64xf32>
    %27 = arith.addf %21, %26 : vector<1x64xf32>
    %28 = math.rsqrt %27 : vector<1x64xf32>
    %29 = vector.broadcast %28 : vector<1x64xf32> to vector<8x64xf32>
    %30 = arith.mulf %25, %29 : vector<8x64xf32>
    %31 = vector.broadcast %4 : vector<1x64xf32> to vector<8x64xf32>
    %32 = arith.addf %30, %31 : vector<8x64xf32>
    %cst_17 = arith.constant 0.000000e+00 : f32
    %33 = vector.broadcast %cst_17 : f32 to vector<8x64xf32>
    %34 = arith.maximumf %32, %33 : vector<8x64xf32>
    %c0_18 = arith.constant 0 : index
    %c0_19 = arith.constant 0 : index
    %35 = vector.load %arg2[%c0_18, %c0_19] : memref<64x320xf32, #tpu.memory_space<vmem>>, vector<64x320xf32>
    %cst_20 = arith.constant dense<0.000000e+00> : vector<8x320xf32>
    %36 = tpu.matmul %34, %35, %cst_20 {dimension_numbers = #tpu.dot_dimension_numbers<[1], [0], [0], [1], [0, 0, 1, 1], [], []>} : vector<8x64xf32>, vector<64x320xf32>, vector<8x320xf32> -> vector<8x320xf32>
    %cst_21 = arith.constant dense<0.000000e+00> : vector<320xf32>
    %37 = vector.multi_reduction <add>, %36, %cst_21 [0] : vector<8x320xf32> to vector<320xf32>
    %38 = vector.shape_cast %37 : vector<320xf32> to vector<1x320xf32>
    %cst_22 = arith.constant 8.000000e+00 : f32
    %39 = vector.broadcast %cst_22 : f32 to vector<1x320xf32>
    %40 = arith.divf %38, %39 : vector<1x320xf32>
    %41 = vector.broadcast %40 : vector<1x320xf32> to vector<8x320xf32>
    %42 = arith.subf %36, %41 : vector<8x320xf32>
    %43 = arith.mulf %42, %42 : vector<8x320xf32>
    %cst_23 = arith.constant dense<0.000000e+00> : vector<320xf32>
    %44 = vector.multi_reduction <add>, %43, %cst_23 [0] : vector<8x320xf32> to vector<320xf32>
    %45 = vector.shape_cast %44 : vector<320xf32> to vector<1x320xf32>
    %cst_24 = arith.constant 8.000000e+00 : f32
    %46 = vector.broadcast %cst_24 : f32 to vector<1x320xf32>
    %47 = arith.divf %45, %46 : vector<1x320xf32>
    %48 = vector.broadcast %40 : vector<1x320xf32> to vector<8x320xf32>
    %49 = arith.subf %36, %48 : vector<8x320xf32>
    %50 = vector.broadcast %5 : vector<1x320xf32> to vector<8x320xf32>
    %51 = arith.mulf %50, %49 : vector<8x320xf32>
    %cst_25 = arith.constant 9.99999974E-6 : f32
    %52 = vector.broadcast %cst_25 : f32 to vector<1x320xf32>
    %53 = arith.addf %47, %52 : vector<1x320xf32>
    %54 = math.rsqrt %53 : vector<1x320xf32>
    %55 = vector.broadcast %54 : vector<1x320xf32> to vector<8x320xf32>
    %56 = arith.mulf %51, %55 : vector<8x320xf32>
    %57 = vector.broadcast %6 : vector<1x320xf32> to vector<8x320xf32>
    %58 = arith.addf %56, %57 : vector<8x320xf32>
    %cst_26 = arith.constant 0.000000e+00 : f32
    %59 = vector.broadcast %cst_26 : f32 to vector<8x320xf32>
    %60 = arith.maximumf %58, %59 : vector<8x320xf32>
    %c0_27 = arith.constant 0 : index
    %c0_28 = arith.constant 0 : index
    %61 = vector.load %arg3[%c0_27, %c0_28] : memref<320x64xf32, #tpu.memory_space<vmem>>, vector<320x64xf32>
    %cst_29 = arith.constant dense<0.000000e+00> : vector<8x64xf32>
    %62 = tpu.matmul %60, %61, %cst_29 {dimension_numbers = #tpu.dot_dimension_numbers<[1], [0], [0], [1], [0, 0, 1, 1], [], []>} : vector<8x320xf32>, vector<320x64xf32>, vector<8x64xf32> -> vector<8x64xf32>
    %63 = vector.broadcast %1 : vector<1x64xf32> to vector<8x64xf32>
    %64 = arith.addf %62, %63 : vector<8x64xf32>
    %c0_30 = arith.constant 0 : index
    %c0_31 = arith.constant 0 : index
    %65 = vector.load %arg4[%c0_30, %c0_31] : memref<64x72xf32, #tpu.memory_space<vmem>>, vector<64x72xf32>
    %cst_32 = arith.constant dense<0.000000e+00> : vector<8x72xf32>
    %66 = tpu.matmul %64, %65, %cst_32 {dimension_numbers = #tpu.dot_dimension_numbers<[1], [0], [0], [1], [0, 0, 1, 1], [], []>} : vector<8x64xf32>, vector<64x72xf32>, vector<8x72xf32> -> vector<8x72xf32>
    %67 = vector.broadcast %2 : vector<1x72xf32> to vector<8x72xf32>
    %68 = arith.addf %66, %67 : vector<8x72xf32>
    %69 = tpu.iota {dimensions = array<i32: 1>} : vector<8x72xi32>
    %c52_i32 = arith.constant 52 : i32
    %70 = vector.broadcast %c52_i32 : i32 to vector<8x72xi32>
    %71 = arith.cmpi slt, %69, %70 : vector<8x72xi32>
    %cst_33 = arith.constant 0.000000e+00 : f32
    %72 = vector.broadcast %cst_33 : f32 to vector<8x72xf32>
    %73 = arith.subf %72, %68 : vector<8x72xf32>
    %74 = math.exp %73 : vector<8x72xf32>
    %cst_34 = arith.constant 1.000000e+00 : f32
    %75 = vector.broadcast %cst_34 : f32 to vector<8x72xf32>
    %76 = arith.addf %75, %74 : vector<8x72xf32>
    %77 = tpu.reciprocal %76 {approx = true} : vector<8x72xf32> -> vector<8x72xf32>
    %78 = arith.select %71, %68, %77 : vector<8x72xi1>, vector<8x72xf32>
    %79 = arith.subf %0, %78 : vector<8x72xf32>
    %80 = arith.mulf %79, %79 : vector<8x72xf32>
    %cst_35 = arith.constant 0.000000e+00 : f32
    %81 = vector.broadcast %cst_35 : f32 to vector<8x72xf32>
    %82 = arith.select %71, %80, %81 : vector<8x72xi1>, vector<8x72xf32>
    %83 = vector.shape_cast %82 : vector<8x72xf32> to vector<1x8x72xf32>
    %cst_36 = arith.constant dense<0.000000e+00> : vector<1xf32>
    %84 = vector.multi_reduction <add>, %83, %cst_36 [1, 2] : vector<1x8x72xf32> to vector<1xf32>
    %85 = vector.shape_cast %84 : vector<1xf32> to vector<1x1x1xf32>
    %86 = vector.extract %85[0, 0, 0] : f32 from vector<1x1x1xf32>
    %87 = vector.broadcast %86 : f32 to vector<1x1xf32>
    %88 = vector.shape_cast %80 : vector<8x72xf32> to vector<1x8x72xf32>
    %cst_37 = arith.constant dense<0.000000e+00> : vector<1xf32>
    %89 = vector.multi_reduction <add>, %88, %cst_37 [1, 2] : vector<1x8x72xf32> to vector<1xf32>
    %90 = vector.shape_cast %89 : vector<1xf32> to vector<1x1x1xf32>
    %91 = vector.extract %90[0, 0, 0] : f32 from vector<1x1x1xf32>
    %92 = vector.broadcast %91 : f32 to vector<1x1xf32>
    %93 = arith.subf %92, %87 : vector<1x1xf32>
    %cst_38 = arith.constant 0.00240384624 : f32
    %94 = vector.broadcast %cst_38 : f32 to vector<1x1xf32>
    %95 = arith.mulf %94, %87 : vector<1x1xf32>
    %cst_39 = arith.constant 6.250000e-03 : f32
    %96 = vector.broadcast %cst_39 : f32 to vector<1x1xf32>
    %97 = arith.mulf %96, %93 : vector<1x1xf32>
    %cst_40 = arith.constant dense<0.000000e+00> : vector<64xf32>
    %98 = vector.multi_reduction <add>, %64, %cst_40 [0] : vector<8x64xf32> to vector<64xf32>
    %99 = vector.shape_cast %98 : vector<64xf32> to vector<1x64xf32>
    %cst_41 = arith.constant 8.000000e+00 : f32
    %100 = vector.broadcast %cst_41 : f32 to vector<1x64xf32>
    %101 = arith.divf %99, %100 : vector<1x64xf32>
    %102 = vector.broadcast %101 : vector<1x64xf32> to vector<8x64xf32>
    %103 = arith.subf %64, %102 : vector<8x64xf32>
    %104 = arith.mulf %103, %103 : vector<8x64xf32>
    %cst_42 = arith.constant dense<0.000000e+00> : vector<64xf32>
    %105 = vector.multi_reduction <add>, %104, %cst_42 [0] : vector<8x64xf32> to vector<64xf32>
    %106 = vector.shape_cast %105 : vector<64xf32> to vector<1x64xf32>
    %cst_43 = arith.constant 8.000000e+00 : f32
    %107 = vector.broadcast %cst_43 : f32 to vector<1x64xf32>
    %108 = arith.divf %106, %107 : vector<1x64xf32>
    %109 = vector.broadcast %101 : vector<1x64xf32> to vector<8x64xf32>
    %110 = arith.subf %64, %109 : vector<8x64xf32>
    %111 = vector.broadcast %7 : vector<1x64xf32> to vector<8x64xf32>
    %112 = arith.mulf %111, %110 : vector<8x64xf32>
    %cst_44 = arith.constant 9.99999974E-6 : f32
    %113 = vector.broadcast %cst_44 : f32 to vector<1x64xf32>
    %114 = arith.addf %108, %113 : vector<1x64xf32>
    %115 = math.rsqrt %114 : vector<1x64xf32>
    %116 = vector.broadcast %115 : vector<1x64xf32> to vector<8x64xf32>
    %117 = arith.mulf %112, %116 : vector<8x64xf32>
    %118 = vector.broadcast %8 : vector<1x64xf32> to vector<8x64xf32>
    %119 = arith.addf %117, %118 : vector<8x64xf32>
    %120 = vector.extract_strided_slice %119 {offsets = [0, 0], sizes = [8, 32], strides = [1, 1]} : vector<8x64xf32> to vector<8x32xf32>
    %121 = vector.extract_strided_slice %119 {offsets = [0, 32], sizes = [8, 32], strides = [1, 1]} : vector<8x64xf32> to vector<8x32xf32>
    %cst_45 = arith.constant dense<0.000000e+00> : vector<32x32xf32>
    %122 = tpu.matmul %120, %121, %cst_45 {dimension_numbers = #tpu.dot_dimension_numbers<[0], [0], [1], [1], [0, 1, 1, 1], [], []>} : vector<8x32xf32>, vector<8x32xf32>, vector<32x32xf32> -> vector<32x32xf32>
    %cst_46 = arith.constant 8.000000e+00 : f32
    %123 = vector.broadcast %cst_46 : f32 to vector<32x32xf32>
    %124 = arith.divf %122, %123 : vector<32x32xf32>
    %125 = tpu.iota {dimensions = array<i32: 0>} : vector<32x32xi32>
    %126 = tpu.iota {dimensions = array<i32: 1>} : vector<32x32xi32>
    %127 = arith.cmpi eq, %125, %126 : vector<32x32xi32>
    %cst_47 = arith.constant 0.000000e+00 : f32
    %128 = vector.broadcast %cst_47 : f32 to vector<32x32xf32>
    %129 = arith.select %127, %124, %128 : vector<32x32xi1>, vector<32x32xf32>
    %130 = vector.shape_cast %129 : vector<32x32xf32> to vector<1x32x32xf32>
    %cst_48 = arith.constant dense<0.000000e+00> : vector<1xf32>
    %131 = vector.multi_reduction <add>, %130, %cst_48 [1, 2] : vector<1x32x32xf32> to vector<1xf32>
    %132 = vector.shape_cast %131 : vector<1xf32> to vector<1x1x1xf32>
    %133 = vector.extract %132[0, 0, 0] : f32 from vector<1x1x1xf32>
    %134 = vector.broadcast %133 : f32 to vector<1x1xf32>
    %135 = arith.mulf %129, %129 : vector<32x32xf32>
    %136 = vector.shape_cast %135 : vector<32x32xf32> to vector<1x32x32xf32>
    %cst_49 = arith.constant dense<0.000000e+00> : vector<1xf32>
    %137 = vector.multi_reduction <add>, %136, %cst_49 [1, 2] : vector<1x32x32xf32> to vector<1xf32>
    %138 = vector.shape_cast %137 : vector<1xf32> to vector<1x1x1xf32>
    %139 = vector.extract %138[0, 0, 0] : f32 from vector<1x1x1xf32>
    %140 = vector.broadcast %139 : f32 to vector<1x1xf32>
    %141 = arith.mulf %124, %124 : vector<32x32xf32>
    %142 = vector.shape_cast %141 : vector<32x32xf32> to vector<1x32x32xf32>
    %cst_50 = arith.constant dense<0.000000e+00> : vector<1xf32>
    %143 = vector.multi_reduction <add>, %142, %cst_50 [1, 2] : vector<1x32x32xf32> to vector<1xf32>
    %144 = vector.shape_cast %143 : vector<1xf32> to vector<1x1x1xf32>
    %145 = vector.extract %144[0, 0, 0] : f32 from vector<1x1x1xf32>
    %146 = vector.broadcast %145 : f32 to vector<1x1xf32>
    %cst_51 = arith.constant 2.000000e+00 : f32
    %147 = vector.broadcast %cst_51 : f32 to vector<1x1xf32>
    %148 = arith.mulf %147, %134 : vector<1x1xf32>
    %149 = arith.subf %140, %148 : vector<1x1xf32>
    %cst_52 = arith.constant 3.200000e+01 : f32
    %150 = vector.broadcast %cst_52 : f32 to vector<1x1xf32>
    %151 = arith.addf %149, %150 : vector<1x1xf32>
    %152 = arith.subf %146, %140 : vector<1x1xf32>
    %cst_53 = arith.constant 5.100000e-03 : f32
    %153 = vector.broadcast %cst_53 : f32 to vector<1x1xf32>
    %154 = arith.mulf %153, %152 : vector<1x1xf32>
    %155 = arith.addf %151, %154 : vector<1x1xf32>
    %cst_54 = arith.constant 1.000000e+00 : f32
    %156 = vector.broadcast %cst_54 : f32 to vector<1x1xf32>
    %157 = arith.mulf %156, %155 : vector<1x1xf32>
    %158 = arith.addf %97, %95 : vector<1x1xf32>
    %159 = arith.addf %158, %157 : vector<1x1xf32>
    %cst_55 = arith.constant 0.000000e+00 : f32
    %160 = vector.broadcast %cst_55 : f32 to vector<8x120xf32>
    %161 = tpu.concatenate %64, %78, %160 in 1 : vector<8x64xf32>, vector<8x72xf32>, vector<8x120xf32> -> vector<8x256xf32>
    %c0_56 = arith.constant 0 : index
    %c0_57 = arith.constant 0 : index
    %162 = vector.load %arg6[%c0_56, %c0_57] : memref<8x256xf32, #tpu.memory_space<vmem>>, vector<8x256xf32>
    tpu.vector_store %arg6[%c0_56, %c0_57], %161 {strides = array<i32>} : memref<8x256xf32, #tpu.memory_space<vmem>>, vector<8x256xf32>,
    %163 = tpu.concatenate %97, %95, %157, %159 in 1 : vector<1x1xf32>, vector<1x1xf32>, vector<1x1xf32>, vector<1x1xf32> -> vector<1x4xf32>
    %c0_58 = arith.constant 0 : index
    %c0_59 = arith.constant 0 : index
    %164 = vector.load %arg7[%c0_58, %c0_59] : memref<1x4xf32, #tpu.memory_space<vmem>>, vector<1x4xf32>
    tpu.vector_store %arg7[%c0_58, %c0_59], %163 {strides = array<i32>} : memref<1x4xf32, #tpu.memory_space<vmem>>, vector<1x4xf32>,
    return
  }
}

</mosaic_0001>

<bundles_post_ra>
// kernel: tpu_custom_call.1
= control target key start
LH: loop header
LB: loop body
LE: loop exit
PB: predicated region body
PF: predicated region fallthrough
CT: control target
= control target key end

     0   :  { %13 = vsyncpa [#allocation3], 0  ;;  %v1351_v3 = vmov 0.0|0.0   ;;  %vm1352_vm0 = vmmov 0   ;;  %v1353_v6 = vmov 0.0   ;;  %s1774_s0 = inlined_call_operand.vmem [shape: f32[8,72], index: 0, kind: input, shape index: {}]   ;;  %s1775_s1 = inlined_call_operand.vmem [shape: f32[72,64], index: 1, kind: input, shape index: {}]   ;;  %s1776_s2 = inlined_call_operand.vmem [shape: f32[64,320], index: 2, kind: input, shape index: {}]   ;;  %s1777_s3 = inlined_call_operand.vmem [shape: f32[320,64], index: 3, kind: input, shape index: {}]   ;;  %s1778_s4 = inlined_call_operand.vmem [shape: f32[64,72], index: 4, kind: input, shape index: {}]   ;;  %s1779_s5 = inlined_call_operand.vmem [shape: f32[8,320], index: 5, kind: input, shape index: {}]   ;;  %s1780_s6 = inlined_call_operand.hbm [shape: f32[8,256], index: 6, kind: output, shape index: {0}]   ;;  %s1781_s7 = inlined_call_operand.hbm [shape: f32[1,4], index: 7, kind: output, shape index: {1}]  }
   0x1   :  { %v38_v0 = vld [vmem:[%s1775_s1] sm:$0xff]  ;;  %v39_v1 = vld [vmem:[%s1775_s1 + $0x8] sm:$0xff]  ;;  %v40_v2 = vld [vmem:[%s1775_s1 + $0x10] sm:$0xff]  ;;  %1176 = vmatprep.subr.bf16.mxu0 %v1351_v3  ;;  %1108 = vmatprep.mubr.msk.f32.mxu0 %vm1352_vm0, %v1353_v6 }
   0x2   :  { %v1177_v4 = vpack.c.bf16 %v39_v1, %v38_v0  ;;  %v41_v5 = vld [vmem:[%s1775_s1 + $0x18] sm:$0xff]  ;;  %238 = vmatprep.mubr.f32.mxu1 %v1353_v6  ;;  %v42_v8 = vld [vmem:[%s1775_s1 + $0x20] sm:$0xff]  ;;  %v43_v9 = vld [vmem:[%s1775_s1 + $0x28] sm:$0xff] }
   0x3   :  { %v1180_v7 = vpack.c.bf16 %v41_v5, %v40_v2 }
   0x4   :  { %1178 = vmatpush3.bf16.msra.mxu0 %v1177_v4 }
   0x5   :  { %1179 = vmatprep.subr.bf16.mxu0 %v1351_v3 }
   0x6   :  { %14 = vsyncpa [#allocation5], 0  ;;  %v1183_v10 = vpack.c.bf16 %v43_v9, %v42_v8  ;;  %v44_v11 = vld [vmem:[%s1775_s1 + $0x30] sm:$0xff]  ;;  %v45_v12 = vld [vmem:[%s1775_s1 + $0x38] sm:$0xff]  ;;  %vm47_vm1 = vcmask 588800   ;;  %vm121_vm2 = vcmask 523264  }
   0x7   :  { %v1186_v13 = vpack.c.bf16 %v45_v12, %v44_v11  ;;  %v46_v14 = vld [vmem:[%s1775_s1 + $0x40] sm:$0xff]  ;;  %v148_v16 = vld [vmem:[%s1776_s2 + $0x8] sm:$0xff]  ;;  %v150_v20 = vld [vmem:[%s1776_s2 + $0x18] sm:$0xff]  ;;  %s1354_s23 = smov 96   ;;  %vm775_vm3 = vcmask 64512   ;;  %vm890_vm6 = vcmask 261120  }
   0x8   :  { %1181 = vmatpush3.bf16.msra.mxu0 %v1180_v7  ;;  %v1436_v15 = vld [vmem:[%s1774_s0] sm:$0xff]  ;;  %v154_v22 = vld [vmem:[%s1776_s2 + $0x38] sm:$0xff]  ;;  %v157_v23 = vld [vmem:[%s1776_s2 + $0x50] sm:$0xff]  ;;  %s1356_s1 = smov [#allocation2]  }
   0x9   :  { %1182 = vmatprep.subr.bf16.mxu0 %v1351_v3  ;;  %v151_v17 = vld [vmem:[%s1776_s2 + $0x20] sm:$0xff]  ;;  %v1192_v24 = vpack.c.bf16 %v157_v23, %v154_v22  ;;  %v153_v25 = vld [vmem:[%s1776_s2 + $0x30] sm:$0xff]  ;;  %v156_v26 = vld [vmem:[%s1776_s2 + $0x48] sm:$0xff]  ;;  %s980_s25 = sshll.u32 %s1356_s1, 4  ;;  %s981_s25 = int_to_ptr.vmem [resolvable:$true] %s980_s25 }
   0xa   :  { %v1188_v18 = vpack.c.bf16 %v151_v17, %v148_v16  ;;  %v147_v19 = vld [vmem:[%s1776_s2] sm:$0xff]  ;;  %v1194_v27 = vpack.c.bf16 %v156_v26, %v153_v25  ;;  %v160_v28 = vld [vmem:[%s1776_s2 + $0x68] sm:$0xff]  ;;  %v162_v32 = vld [vmem:[%s1776_s2 + $0x78] sm:$0xff]  ;;  %p1308_p1 = scmp.lt.s32.totalorder %s981_s25, %s981_s25 }
   0xb   :  { %v1190_v21 = vpack.c.bf16 %v150_v20, %v147_v19  ;;  %v163_v29 = vld [vmem:[%s1776_s2 + $0x80] sm:$0xff]  ;;  %v166_v34 = vld [vmem:[%s1776_s2 + $0x98] sm:$0xff]  ;;  %v169_v35 = vld [vmem:[%s1776_s2 + $0xb0] sm:$0xff] }
   0xc   :  { %1184 = vmatpush3.bf16.msra.mxu0 %v1183_v10  ;;  %1189 = vmatprep.subr.bf16.mxu1 %v1188_v18  ;;  %v1196_v30 = vpack.c.bf16 %v163_v29, %v160_v28  ;;  %v159_v31 = vld [vmem:[%s1776_s2 + $0x60] sm:$0xff]  ;;  %v1200_v36 = vpack.c.bf16 %v169_v35, %v166_v34  ;;  %v165_v37 = vld [vmem:[%s1776_s2 + $0x90] sm:$0xff]  ;;  %v168_v38 = vld [vmem:[%s1776_s2 + $0xa8] sm:$0xff] }
   0xd   :  { %1185 = vmatprep.subr.bf16.mxu0 %v1351_v3  ;;  %1191 = vmatpush1.bf16.msra.mxu1 %v1190_v21  ;;  %v1198_v33 = vpack.c.bf16 %v162_v32, %v159_v31  ;;  %v1202_v39 = vpack.c.bf16 %v168_v38, %v165_v37  ;;  %v30_v61 = vld [vmem:[%s1779_s5 + $0x2] ss:$0 sm:$0xff]  ;;  %v31_v0 = vld [vmem:[%s1779_s5 + $0x3] ss:$0 sm:$0xff]  ;;  %v149_v2 = vld [vmem:[%s1776_s2 + $0x10] sm:$0xff] }
   0xe   :  { %1193 = vmatprep.subr.bf16.mxu1 %v1192_v24  ;;  %v152_v4 = vld [vmem:[%s1776_s2 + $0x28] sm:$0xff]  ;;  %v155_v9 = vld [vmem:[%s1776_s2 + $0x40] sm:$0xff]  ;;  %v158_v10 = vld [vmem:[%s1776_s2 + $0x58] sm:$0xff] }
   0xf   :  { %v1205_v7 = vpack.c.bf16 %v152_v4, %v149_v2  ;;  %v1208_v11 = vpack.c.bf16 %v158_v10, %v155_v9  ;;  %v161_v12 = vld [vmem:[%s1776_s2 + $0x70] sm:$0xff]  ;;  %v167_v16 = vld [vmem:[%s1776_s2 + $0xa0] sm:$0xff]  ;;  %v170_v17 = vld [vmem:[%s1776_s2 + $0xb8] sm:$0xff] }
  0x10   :  { %1187 = vmatpush3.bf16.msra.mxu0 %v1186_v13  ;;  %v164_v13 = vld [vmem:[%s1776_s2 + $0x88] sm:$0xff]  ;;  %v1214_v18 = vpack.c.bf16 %v170_v17, %v167_v16  ;;  %v431_v19 = vld [vmem:[%s1777_s3 + $0x80] sm:$0xff]  ;;  %v433_v25 = vld [vmem:[%s1777_s3 + $0x90] sm:$0xff]  ;;  %s1303_s2 = scalar_lea.vmem %s981_s25, 256 }
  0x11   :  { %1106 = vmatprep.subr.mxu0 %v1353_v6  ;;  %1195 = vmatpush1.bf16.msra.mxu1 %v1194_v27  ;;  %v432_v20 = vld [vmem:[%s1777_s3 + $0x88] sm:$0xff]  ;;  %v415_v22 = vld [vmem:[%s1777_s3] sm:$0xff]  ;;  %v434_v26 = vld [vmem:[%s1777_s3 + $0x98] sm:$0xff]  ;;  %p1304_p0 = scmp.ne.s32.totalorder %s981_s25, %s1303_s2  ;;  %p1309_p2 = scmp.lt.s32.totalorder %s1303_s2, %s1303_s2 }
  0x12   :  { %1197 = vmatprep.subr.bf16.mxu1 %v1196_v30  ;;  %v1216_v21 = vpack.c.bf16 %v432_v20, %v431_v19  ;;  %v416_v23 = vld [vmem:[%s1777_s3 + $0x8] sm:$0xff]  ;;  %v1220_v27 = vpack.c.bf16 %v434_v26, %v433_v25  ;;  %v417_v28 = vld [vmem:[%s1777_s3 + $0x10] sm:$0xff]  ;;  %v418_v29 = vld [vmem:[%s1777_s3 + $0x18] sm:$0xff] }
  0x13   :  { %v1218_v24 = vpack.c.bf16 %v416_v23, %v415_v22  ;;  %v1222_v30 = vpack.c.bf16 %v418_v29, %v417_v28  ;;  %v435_v31 = vld [vmem:[%s1777_s3 + $0xa0] sm:$0xff]  ;;  %v436_v32 = vld [vmem:[%s1777_s3 + $0xa8] sm:$0xff]  ;;  %v437_v37 = vld [vmem:[%s1777_s3 + $0xb0] sm:$0xff]  ;;  %p1310_p3 = por %p1309_p2, %p1308_p1 }
  0x14   :  { %1107 = vmatpush3.msra.mxu0 %v46_v14  ;;  %v1211_v14 = vpack.c.bf16 %v164_v13, %v161_v12  ;;  %v419_v34 = vld [vmem:[%s1777_s3 + $0x20] sm:$0xff]  ;;  %v420_v35 = vld [vmem:[%s1777_s3 + $0x28] sm:$0xff]  ;;  %v438_v38 = vld [vmem:[%s1777_s3 + $0xb8] sm:$0xff] }
  0x15   :  { %1109 = vmatmul.mubr.msk.f32.vlgmr.msra.gmra.mrb[0].mxu0 %vm47_vm1, %v1436_v15  ;;  %1199 = vmatpush1.bf16.msra.mxu1 %v1198_v33  ;;  %v1224_v33 = vpack.c.bf16 %v436_v32, %v435_v31  ;;  %v447_v4 = vld [vmem:[%s1777_s3 + $0x100] sm:$0xff]  ;;  %v450_v9 = vld [vmem:[%s1777_s3 + $0x118] sm:$0xff]  ;;  %v452_v12 = vld [vmem:[%s1777_s3 + $0x128] sm:$0xff]  ;;  %p1311_p4 = pnand %p1310_p3, %p1304_p0 }
  0x16   :  { %1201 = vmatprep.subr.bf16.mxu1 %v1200_v36  ;;  %1217 = vmatprep.subr.bf16.mxu0 %v1216_v21  ;;  %v1226_v36 = vpack.c.bf16 %v420_v35, %v419_v34  ;;  %v454_v16 = vld [vmem:[%s1777_s3 + $0x138] sm:$0xff] }
  0x17   :  { %1219 = vmatpush3.bf16.msra.mxu0 %v1218_v24 }
  0x18   :  { %1221 = vmatprep.subr.bf16.mxu0 %v1220_v27 }
  0x19   :  { %1203 = vmatpush1.bf16.msra.mxu1 %v1202_v39  ;;  %v1228_v39 = vpack.c.bf16 %v438_v38, %v437_v37 }
  0x1a   :  { %1204 = vmatprep.subr.bf16.mxu1 %v1351_v3 }
  0x1b   :  { %1223 = vmatpush3.bf16.msra.mxu0 %v1222_v30 }
  0x1c   :  { %1225 = vmatprep.subr.bf16.mxu0 %v1224_v33 }
  0x1f   :  { %1227 = vmatpush3.bf16.msra.mxu0 %v1226_v36 }
  0x20   :  { %1229 = vmatprep.subr.bf16.mxu0 %v1228_v39 }
  0xe8   :  { %v117_v40 = vpop.f32.mrb[0].mxu0 }
  0xe9   :  { %v122_v41 = vsel %vm121_vm2, %v117_v40, 0.0  ;;  %v1110_v42 = vpop.f32.mrb[1].mxu0 }
  0xea   :  { %v123_v43 = vrot.slane %v122_v41, 4 }
  0xec   :  { %v124_v44 = vadd.f32 %v123_v43, %v122_v41  ;;  %v422_v41 = vld [vmem:[%s1777_s3 + $0x38] sm:$0xff]  ;;  %v439_v43 = vld [vmem:[%s1777_s3 + $0xc0] sm:$0xff] }
  0xee   :  { %v125_v45 = vrot.slane %v124_v44, 2 }
  0xf0   :  { %v126_v46 = vadd.f32 %v125_v45, %v124_v44  ;;  %v440_v44 = vld [vmem:[%s1777_s3 + $0xc8] sm:$0xff] }
  0xf1   :  { %v1232_v45 = vpack.c.bf16 %v440_v44, %v439_v43 }
  0xf2   :  { %v127_v47 = vrot.slane %v126_v46, 1 }
  0xf4   :  { %v128_v48 = vadd.f32 %v127_v47, %v126_v46  ;;  %v423_v46 = vld [vmem:[%s1777_s3 + $0x40] sm:$0xff]  ;;  %v424_v47 = vld [vmem:[%s1777_s3 + $0x48] sm:$0xff] }
  0xf6   :  { %v130_v49 = vmul.f32 0.125, %v128_v48  ;;  %v1234_v48 = vpack.c.bf16 %v424_v47, %v423_v46 }
  0xf8   :  { %v131_v50 = vsub.f32 %v117_v40, %v130_v49  ;;  %v421_v40 = vld [vmem:[%s1777_s3 + $0x30] sm:$0xff] }
  0xf9   :  { %v1230_v42 = vpack.c.bf16 %v422_v41, %v421_v40  ;;  %v441_v49 = vld [vmem:[%s1777_s3 + $0xd0] sm:$0xff] }
  0xfa   :  { %v132_v51 = vmul.f32 %v131_v50, %v131_v50  ;;  %v141_v62 = vmul.f32 %v131_v50, %v30_v61  ;;  %v442_v50 = vld [vmem:[%s1777_s3 + $0xd8] sm:$0xff]  ;;  %v445_v61 = vld [vmem:[%s1777_s3 + $0xf0] sm:$0xff] }
  0xfb   :  { %1231 = vmatpush3.bf16.msra.mxu0 %v1230_v42 }
  0xfc   :  { %v133_v52 = vsel %vm121_vm2, %v132_v51, 0.0  ;;  %1233 = vmatprep.subr.bf16.mxu0 %v1232_v45  ;;  %v1236_v51 = vpack.c.bf16 %v442_v50, %v441_v49 }
  0xfd   :  { %v134_v53 = vrot.slane %v133_v52, 4 }
  0xff   :  { %v135_v54 = vadd.f32 %v134_v53, %v133_v52  ;;  %1235 = vmatpush3.bf16.msra.mxu0 %v1234_v48  ;;  %v425_v52 = vld [vmem:[%s1777_s3 + $0x50] sm:$0xff]  ;;  %v426_v53 = vld [vmem:[%s1777_s3 + $0x58] sm:$0xff] }
 0x100   :  { %1237 = vmatprep.subr.bf16.mxu0 %v1236_v51 }
 0x101   :  { %v136_v55 = vrot.slane %v135_v54, 2 }
 0x103   :  { %v137_v56 = vadd.f32 %v136_v55, %v135_v54  ;;  %v1238_v54 = vpack.c.bf16 %v426_v53, %v425_v52  ;;  %v443_v55 = vld [vmem:[%s1777_s3 + $0xe0] sm:$0xff] }
 0x105   :  { %v138_v57 = vrot.slane %v137_v56, 1  ;;  %1239 = vmatpush3.bf16.msra.mxu0 %v1238_v54 }
 0x107   :  { %v139_v58 = vadd.f32 %v138_v57, %v137_v56  ;;  %v444_v56 = vld [vmem:[%s1777_s3 + $0xe8] sm:$0xff] }
 0x108   :  { %v1240_v57 = vpack.c.bf16 %v444_v56, %v443_v55  ;;  %v366_v55 = vlaneseq }
 0x109   :  { %v140_v59 = vmul.f32 0.125, %v139_v58  ;;  %v427_v58 = vld [vmem:[%s1777_s3 + $0x60] sm:$0xff] }
 0x10a   :  { %1241 = vmatprep.subr.bf16.mxu0 %v1240_v57 }
 0x10b   :  { %v142_v60 = vadd.f32 1e-05, %v140_v59  ;;  %v428_v59 = vld [vmem:[%s1777_s3 + $0x68] sm:$0xff] }
 0x10d   :  { %1289 = vrsqrt.f32 %v142_v60  ;;  %v1242_v60 = vpack.c.bf16 %v428_v59, %v427_v58 }
 0x10f   :  { %1243 = vmatpush3.bf16.msra.mxu0 %v1242_v60 }
 0x117   :  { %v1290_v63 = vpop.eup %1289 }
 0x118   :  { %v144_v1 = vmul.f32 %v1290_v63, %v141_v62  ;;  %v446_v62 = vld [vmem:[%s1777_s3 + $0xf8] sm:$0xff] }
 0x119   :  { %v1244_v63 = vpack.c.bf16 %v446_v62, %v445_v61  ;;  %v1657_v62 = vshrl.u32 %v366_v55, 7 }
 0x11a   :  { %v145_v5 = vadd.f32 %v144_v1, %v31_v0  ;;  %v429_v0 = vld [vmem:[%s1777_s3 + $0x70] sm:$0xff]  ;;  %v430_v1 = vld [vmem:[%s1777_s3 + $0x78] sm:$0xff] }
 0x11b   :  { %v1246_v2 = vpack.c.bf16 %v430_v1, %v429_v0  ;;  %1245 = vmatprep.subr.bf16.mxu0 %v1244_v63 }
 0x11c   :  { %v146_v8 = vmax.f32 %v145_v5, 0.0  ;;  %v448_v5 = vld [vmem:[%s1777_s3 + $0x108] sm:$0xff] }
 0x11d   :  { %1247 = vmatpush3.bf16.msra.mxu0 %v1246_v2 }
 0x11e   :  { %1005 = vmatmul.mubr.msk.f32.vlgmr.msra.gmra.mrb[0].mxu1 %vm121_vm2, %v146_v8 }
 0x11f   :  { %1206 = vmatpush3.bf16.msra.mxu1 %v1205_v7  ;;  %1127 = vmatprep.mubr.msk.f32.mxu1 %vm1352_vm0, %v1353_v6  ;;  %v1249_v7 = vpack.c.bf16 %v448_v5, %v447_v4  ;;  %v368_v5 = vsub.s32 0, %v1657_v62 }
 0x120   :  { %1207 = vmatprep.subr.bf16.mxu1 %v1351_v3 }
 0x123   :  { %1209 = vmatpush3.bf16.msra.mxu1 %v1208_v11  ;;  %v451_v11 = vld [vmem:[%s1777_s3 + $0x120] sm:$0xff] }
 0x124   :  { %1210 = vmatprep.subr.bf16.mxu1 %v1351_v3  ;;  %v1255_v13 = vpack.c.bf16 %v452_v12, %v451_v11 }
 0x127   :  { %1212 = vmatpush3.bf16.msra.mxu1 %v1211_v14  ;;  %v453_v14 = vld [vmem:[%s1777_s3 + $0x130] sm:$0xff] }
 0x128   :  { %1213 = vmatprep.subr.bf16.mxu1 %v1351_v3  ;;  %v1258_v17 = vpack.c.bf16 %v454_v16, %v453_v14  ;;  %v1003_v14 = vld [vmem:[%s1779_s5 + $0x5] ss:$8 sm:$0x7] }
 0x12b   :  { %1215 = vmatpush3.bf16.msra.mxu1 %v1214_v18 }
 0x12c   :  { %1248 = vmatprep.subr.bf16.mxu1 %v1351_v3 }
 0x12e   :  { %1128 = vmatmul.mubr.msk.f32.vlgmr.msra.gmra.mrb[2].mxu1 %vm121_vm2, %v146_v8  ;;  %v449_v8 = vld [vmem:[%s1777_s3 + $0x110] sm:$0xff] }
 0x12f   :  { %1146 = vmatprep.mubr.msk.f32.mxu1 %vm1352_vm0, %v1353_v6  ;;  %1250 = vmatpush3.bf16.msra.mxu1 %v1249_v7  ;;  %v1252_v10 = vpack.c.bf16 %v450_v9, %v449_v8  ;;  %v1002_v8 = vld [vmem:[%s1779_s5 + $0x4] ss:$8 sm:$0x7]  ;;  %v372_v9 = vsub.s32 1, %v1657_v62 }
 0x130   :  { %1251 = vmatprep.subr.bf16.mxu1 %v1351_v3  ;;  %v369_v12 = vrot.slane %v1002_v8, %v368_v5 }
 0x133   :  { %1253 = vmatpush3.bf16.msra.mxu1 %v1252_v10 }
 0x134   :  { %1254 = vmatprep.subr.bf16.mxu1 %v1351_v3 }
 0x137   :  { %1256 = vmatpush3.bf16.msra.mxu1 %v1255_v13  ;;  %v373_v13 = vrot.slane %v1002_v8, %v372_v9 }
 0x138   :  { %1257 = vmatprep.subr.bf16.mxu1 %v1351_v3 }
 0x13b   :  { %1259 = vmatpush3.bf16.msra.mxu1 %v1258_v17 }
 0x13c   :  { %1260 = vmatprep.subr.bf16.mxu1 %v1351_v3 }
 0x1f1   :  { %v240_v18 = vpop.f32.mrb[0].mxu1 }
 0x1f2   :  { %v315_v19 = vrot.slane %v240_v18, 4  ;;  %v242_v20 = vpop.f32.mrb[1].mxu1 }
 0x1f3   :  { %v321_v21 = vrot.slane %v242_v20, 4 }
 0x1f4   :  { %v316_v22 = vadd.f32 %v315_v19, %v240_v18  ;;  %v397_v19 = vrot.slane %v1003_v14, %v368_v5 }
 0x1f5   :  { %v322_v23 = vadd.f32 %v321_v21, %v242_v20 }
 0x1f6   :  { %v317_v24 = vrot.slane %v316_v22, 2 }
 0x1f7   :  { %v323_v25 = vrot.slane %v322_v23, 2 }
 0x1f8   :  { %v318_v26 = vadd.f32 %v317_v24, %v316_v22 }
 0x1f9   :  { %v324_v27 = vadd.f32 %v323_v25, %v322_v23  ;;  %v401_v23 = vrot.slane %v1003_v14, %v372_v9 }
 0x1fa   :  { %v319_v28 = vrot.slane %v318_v26, 1 }
 0x1fb   :  { %v325_v29 = vrot.slane %v324_v27, 1 }
 0x1fc   :  { %v320_v30 = vadd.f32 %v319_v28, %v318_v26 }
 0x1fd   :  { %v326_v31 = vadd.f32 %v325_v29, %v324_v27 }
 0x1fe   :  { %v334_v32 = vmul.f32 0.125, %v320_v30 }
 0x1ff   :  { %v335_v33 = vmul.f32 0.125, %v326_v31 }
 0x200   :  { %v337_v34 = vsub.f32 %v240_v18, %v334_v32 }
 0x201   :  { %v338_v35 = vsub.f32 %v242_v20, %v335_v33  ;;  %v311_v36 = vpop.f32.mrb[2].mxu1 }
 0x202   :  { %v340_v37 = vmul.f32 %v337_v34, %v337_v34  ;;  %v327_v38 = vsel %vm121_vm2, %v311_v36, 0.0  ;;  %v1129_v39 = vpop.f32.mrb[3].mxu1  ;;  %v381_v18 = vmul.f32 %v369_v12, %v337_v34 }
 0x203   :  { %v341_v40 = vmul.f32 %v338_v35, %v338_v35  ;;  %v328_v41 = vrot.slane %v327_v38, 4  ;;  %v382_v21 = vmul.f32 %v373_v13, %v338_v35 }
 0x204   :  { %v343_v42 = vrot.slane %v340_v37, 4 }
 0x205   :  { %v349_v43 = vrot.slane %v341_v40, 4  ;;  %v329_v44 = vadd.f32 %v328_v41, %v327_v38 }
 0x206   :  { %v344_v45 = vadd.f32 %v343_v42, %v340_v37  ;;  %v598_v42 = vld [vmem:[%s1778_s4] sm:$0xff] }
 0x207   :  { %v350_v46 = vadd.f32 %v349_v43, %v341_v40  ;;  %v330_v47 = vrot.slane %v329_v44, 2  ;;  %v599_v43 = vld [vmem:[%s1778_s4 + $0x8] sm:$0xff] }
 0x208   :  { %v345_v48 = vrot.slane %v344_v45, 2 }
 0x209   :  { %v351_v49 = vrot.slane %v350_v46, 2  ;;  %v331_v50 = vadd.f32 %v330_v47, %v329_v44  ;;  %v1261_v44 = vpack.c.bf16 %v599_v43, %v598_v42 }
 0x20a   :  { %v346_v51 = vadd.f32 %v345_v48, %v344_v45  ;;  %v600_v45 = vld [vmem:[%s1778_s4 + $0x10] sm:$0xff]  ;;  %v603_v48 = vld [vmem:[%s1778_s4 + $0x28] sm:$0xff] }
 0x20b   :  { %v352_v52 = vadd.f32 %v351_v49, %v350_v46  ;;  %v332_v53 = vrot.slane %v331_v50, 1  ;;  %v601_v46 = vld [vmem:[%s1778_s4 + $0x18] sm:$0xff] }
 0x20c   :  { %v347_v54 = vrot.slane %v346_v51, 1  ;;  %v1264_v47 = vpack.c.bf16 %v601_v46, %v600_v45 }
 0x20d   :  { %v353_v56 = vrot.slane %v352_v52, 1  ;;  %v333_v57 = vadd.f32 %v332_v53, %v331_v50  ;;  %v604_v50 = vld [vmem:[%s1778_s4 + $0x30] sm:$0xff] }
 0x20e   :  { %v348_v58 = vadd.f32 %v347_v54, %v346_v51  ;;  %v605_v51 = vld [vmem:[%s1778_s4 + $0x38] sm:$0xff] }
 0x20f   :  { %v354_v59 = vadd.f32 %v353_v56, %v352_v52  ;;  %v336_v60 = vmul.f32 0.125, %v333_v57  ;;  %v1270_v52 = vpack.c.bf16 %v605_v51, %v604_v50  ;;  %v28_v57 = vld [vmem:[%s1779_s5] ss:$0 sm:$0xff] }
 0x210   :  { %v362_v61 = vmul.f32 0.125, %v348_v58 }
 0x211   :  { %v363_v63 = vmul.f32 0.125, %v354_v59  ;;  %v339_v0 = vsub.f32 %v311_v36, %v336_v60  ;;  %v376_v36 = vsub.s32 2, %v1657_v62 }
 0x212   :  { %v384_v1 = vadd.f32 1e-05, %v362_v61 }
 0x213   :  { %v385_v2 = vadd.f32 1e-05, %v363_v63  ;;  %v342_v4 = vmul.f32 %v339_v0, %v339_v0  ;;  %v377_v34 = vrot.slane %v1002_v8, %v376_v36  ;;  %v405_v35 = vrot.slane %v1003_v14, %v376_v36 }
 0x214   :  { %1291 = vrsqrt.f32 %v384_v1 }
 0x215   :  { %1293 = vrsqrt.f32 %v385_v2  ;;  %v355_v7 = vsel %vm121_vm2, %v342_v4, 0.0  ;;  %v383_v37 = vmul.f32 %v377_v34, %v339_v0 }
 0x216   :  { %v356_v10 = vrot.slane %v355_v7, 4 }
 0x218   :  { %v357_v11 = vadd.f32 %v356_v10, %v355_v7 }
 0x21a   :  { %v358_v16 = vrot.slane %v357_v11, 2 }
 0x21c   :  { %v359_v17 = vadd.f32 %v358_v16, %v357_v11 }
 0x21e   :  { %v1292_v20 = vpop.eup %1291  ;;  %v360_v22 = vrot.slane %v359_v17, 1 }
 0x21f   :  { %v1294_v24 = vpop.eup %1293  ;;  %v390_v25 = vmul.f32 %v1292_v20, %v381_v18  ;;  %v36_v20 = vld [vmem:[%s1779_s5 + $0x6] ss:$0 sm:$0xff] }
 0x220   :  { %v361_v26 = vadd.f32 %v360_v22, %v359_v17  ;;  %v391_v27 = vmul.f32 %v1294_v24, %v382_v21 }
 0x221   :  { %v409_v28 = vadd.f32 %v397_v19, %v390_v25 }
 0x222   :  { %v364_v29 = vmul.f32 0.125, %v361_v26  ;;  %v410_v30 = vadd.f32 %v401_v23, %v391_v27  ;;  %v37_v23 = vld [vmem:[%s1779_s5 + $0x7] ss:$0 sm:$0xff] }
 0x223   :  { %v412_v33 = vmax.f32 %v409_v28, 0.0  ;;  %v29_v28 = vld [vmem:[%s1779_s5 + $0x1] ss:$0 sm:$0xff]  ;;  %s1355_s5 = smov 64  }
 0x224   :  { %v386_v31 = vadd.f32 1e-05, %v364_v29  ;;  %v413_v32 = vmax.f32 %v410_v30, 0.0 }
 0x226   :  { %1295 = vrsqrt.f32 %v386_v31  ;;  %522 = vmatprep.mubr.f32.mxu0 %v413_v32 }
 0x227   :  { %523 = vmatmul.mubr.f32.vlgmr.msra.gmra.mrb[2].mxu0 %v412_v33 }
 0x230   :  { %v1296_v38 = vpop.eup %1295 }
 0x231   :  { %v392_v39 = vmul.f32 %v1296_v38, %v383_v37 }
 0x233   :  { %v411_v40 = vadd.f32 %v405_v35, %v392_v39  ;;  %v680_v39 = vand.u32 127, %v366_v55 }
 0x235   :  { %v414_v41 = vmax.f32 %v411_v40, 0.0  ;;  %vm681_vm4 = vcmp.lt.s32.totalorder %v680_v39, 52  ;;  %vm882_vm7 = vcmp.eq.s32.totalorder %v1657_v62, %v680_v39 }
 0x237   :  { %1147 = vmatmul.mubr.msk.f32.vlgmr.msra.gmra.mrb[4].mxu1 %vm121_vm2, %v414_v41 }
 0x238   :  { %1165 = vmatprep.mubr.msk.f32.mxu1 %vm1352_vm0, %v1353_v6  ;;  %1262 = vmatpush3.bf16.msra.mxu1 %v1261_v44  ;;  %v602_v6 = vld [vmem:[%s1778_s4 + $0x20] sm:$0xff] }
 0x239   :  { %1263 = vmatprep.subr.bf16.mxu1 %v1351_v3  ;;  %v1267_v49 = vpack.c.bf16 %v603_v48, %v602_v6 }
 0x23c   :  { %1265 = vmatpush3.bf16.msra.mxu1 %v1264_v47 }
 0x23d   :  { %1266 = vmatprep.subr.bf16.mxu1 %v1351_v3 }
 0x240   :  { %1268 = vmatpush3.bf16.msra.mxu1 %v1267_v49 }
 0x241   :  { %1269 = vmatprep.subr.bf16.mxu1 %v1351_v3 }
 0x244   :  { %1271 = vmatpush3.bf16.msra.mxu1 %v1270_v52 }
 0x2fa   :  { %v1064_v53 = vpop.f32.mrb[2].mxu0 }
 0x2fb   :  { %v1065_v54 = vpop.f32.mrb[3].mxu0 }
 0x2fc   :  { %v1066_v56 = vadd.f32 %v1065_v54, %v1064_v53 }
 0x2fe   :  { %v525_v58 = vadd.f32 %v1066_v56, %v28_v57 }
 0x30a   :  { %v594_v59 = vpop.f32.mrb[4].mxu1 }
 0x30b   :  { %v1702_v3 = vadd.f32 %v594_v59, %v525_v58  ;;  %v1148_v60 = vpop.f32.mrb[5].mxu1  ;;  %v879_v59 = vadd.s32 8, %v1657_v62 }
 0x30d   :  { %v716_v61 = vsel %vm121_vm2, %v1702_v3, 0.0  ;;  %1166 = vmatmul.mubr.msk.f32.vlgmr.msra.gmra.mrb[6].mxu1 %vm121_vm2, %v1702_v3  ;;  %vm883_vm5 = vcmp.eq.s32.totalorder %v879_v59, %v680_v39 }
 0x30e   :  { %v717_v63 = vrot.slane %v716_v61, 4 }
 0x310   :  { %v718_v0 = vadd.f32 %v717_v63, %v716_v61 }
 0x312   :  { %v719_v1 = vrot.slane %v718_v0, 2 }
 0x314   :  { %v720_v2 = vadd.f32 %v719_v1, %v718_v0 }
 0x316   :  { %v721_v4 = vrot.slane %v720_v2, 1 }
 0x318   :  { %v722_v5 = vadd.f32 %v721_v4, %v720_v2  ;;  %v881_v4 = vadd.s32 24, %v1657_v62 }
 0x31a   :  { %v723_v7 = vmul.f32 0.125, %v722_v5  ;;  %vm885_vm8 = vcmp.eq.s32.totalorder %v881_v4, %v680_v39 }
 0x31c   :  { %v724_v8 = vsub.f32 %v1702_v3, %v723_v7 }
 0x31e   :  { %v725_v9 = vmul.f32 %v724_v8, %v724_v8  ;;  %v734_v21 = vmul.f32 %v724_v8, %v36_v20 }
 0x320   :  { %v726_v10 = vsel %vm121_vm2, %v725_v9, 0.0 }
 0x321   :  { %v727_v11 = vrot.slane %v726_v10, 4 }
 0x323   :  { %v728_v12 = vadd.f32 %v727_v11, %v726_v10 }
 0x325   :  { %v729_v13 = vrot.slane %v728_v12, 2 }
 0x327   :  { %v730_v14 = vadd.f32 %v729_v13, %v728_v12  ;;  %v880_v13 = vadd.s32 16, %v1657_v62 }
 0x329   :  { %v731_v16 = vrot.slane %v730_v14, 1  ;;  %vm884_vm9 = vcmp.eq.s32.totalorder %v880_v13, %v680_v39 }
 0x32b   :  { %v732_v17 = vadd.f32 %v731_v16, %v730_v14 }
 0x32d   :  { %v733_v18 = vmul.f32 0.125, %v732_v17 }
 0x32f   :  { %v735_v19 = vadd.f32 1e-05, %v733_v18 }
 0x331   :  { %1297 = vrsqrt.f32 %v735_v19 }
 0x33b   :  { %v1298_v22 = vpop.eup %1297 }
 0x33c   :  { %v737_v24 = vmul.f32 %v1298_v22, %v734_v21 }
 0x33e   :  { %v738_v25 = vadd.f32 %v737_v24, %v37_v23 }
 0x340   :  { %772 = vrot.lane.b32.xlu0 %v738_v25, %s1354_s23 }
 0x35e   :  { %739 = vxpose.xlu0.b32.start.end [1/1] (short) (narrow) %v738_v25, 32 }
 0x3b2   :  { %v773_v26 = vpop.permute.xlu0 %772 }
 0x3b3   :  { %1168 = vmatprep.subr.mxu0 %v773_v26 }
 0x3b4   :  { %1169 = vmatpush3.msra.mxu0 %v773_v26 }
 0x3de   :  { %v755_v27 = vpop.trf.xlu0 }
 0x3df   :  { %1170 = vmatprep.mubr.msk.f32.mxu0 %vm775_vm3, %v755_v27 }
 0x3e0   :  { %v675_v29 = vpop.f32.mrb[6].mxu1 }
 0x3e1   :  { %v676_v30 = vadd.f32 %v675_v29, %v29_v28  ;;  %v1167_v31 = vpop.f32.mrb[7].mxu1 }
 0x3e2   :  { %v756_v32 = vpop.trf.xlu0 }
 0x3e3   :  { %v682_v33 = vsub.f32 0.0, %v676_v30  ;;  %1171 = vmatmul.mubr.msk.f32.vlgmr.msra.gmra.mrb[4].mxu0 %vm775_vm3, %v756_v32 }
 0x3e5   :  { %v683_v36 = vmul.f32 1.442695, %v682_v33 }
 0x3e6   :  { %v757_v34 = vpop.trf.xlu0 }
 0x3e7   :  { %1299 = vpow2.f32 %v683_v36  ;;  %1173 = vmatprep.mubr.msk.f32.mxu0 %vm775_vm3, %v757_v34 }
 0x3ea   :  { %v758_v37 = vpop.trf.xlu0 }
 0x3eb   :  { %1174 = vmatmul.mubr.msk.f32.gmra.mrb[6].mxu0 %vm775_vm3, %v758_v37 }
 0x3f1   :  { %v1300_v35 = vpop.eup %1299 }
 0x3f2   :  { %v685_v38 = vadd.f32 1.0, %v1300_v35 }
 0x3f4   :  { %1301 = vrcp.f32 %v685_v38 }
 0x3fe   :  { %v1302_v40 = vpop.eup %1301 }
 0x3ff   :  { %v1724_v41 = vsel %vm681_vm4, %v676_v30, %v1302_v40 }
 0x400   :  { %v688_v42 = vsub.f32 %v1436_v15, %v1724_v41 }
 0x402   :  { %v689_v43 = vmul.f32 %v688_v42, %v688_v42 }
 0x404   :  { %v702_v44 = vsel %vm47_vm1, %v689_v43, 0.0  ;;  %v690_v45 = vsel %vm681_vm4, %v689_v43, 0.0 }
 0x405   :  { %703 = vadd.xlane.f32.xlu1 %v702_v44  ;;  %v691_v46 = vsel %vm47_vm1, %v690_v45, 0.0 }
 0x409   :  { %692 = vadd.xlane.f32.xlu1 %v691_v46 }
 0x492   :  { %v704_v47 = vpop.xlane.xlu1 %703 }
 0x493   :  { %v705_v6 = vrot.slane %v704_v47, 4 }
 0x495   :  { %v706_v48 = vadd.f32 %v705_v6, %v704_v47 }
 0x496   :  { %v693_v49 = vpop.xlane.xlu1 %692 }
 0x497   :  { %v707_v55 = vrot.slane %v706_v48, 2  ;;  %v694_v50 = vrot.slane %v693_v49, 4 }
 0x499   :  { %v695_v51 = vadd.f32 %v694_v50, %v693_v49  ;;  %v708_v52 = vadd.f32 %v707_v55, %v706_v48 }
 0x49b   :  { %v696_v53 = vrot.slane %v695_v51, 2  ;;  %v709_v56 = vrot.slane %v708_v52, 1 }
 0x49d   :  { %v697_v54 = vadd.f32 %v696_v53, %v695_v51  ;;  %v710_v58 = vadd.f32 %v709_v56, %v708_v52 }
 0x49f   :  { %v698_v15 = vrot.slane %v697_v54, 1 }
 0x4a1   :  { %v699_v57 = vadd.f32 %v698_v15, %v697_v54 }
 0x4a3   :  { %1272 = vpush %v699_v57 }
 0x4a4   :  { %1274 = vpush %v710_v58 }
 0x4b6   :  { %v1172_v60 = vpop.f32.mrb[4].mxu0 }
 0x4b7   :  { %v874_v61 = vmul.f32 0.125, %v1172_v60  ;;  %v854_v63 = vpop.f32.mrb[5].mxu0 }
 0x4b8   :  { %v873_v0 = vmul.f32 0.125, %v854_v63 }
 0x4b9   :  { %v887_v1 = vsel %vm883_vm5, %v874_v61, 0.0  ;;  %v930_v2 = vmul.f32 %v874_v61, %v874_v61 }
 0x4ba   :  { %v892_v5 = vsel %vm890_vm6, %v887_v1, 0.0  ;;  %v909_v7 = vmul.f32 %v887_v1, %v887_v1  ;;  %v886_v8 = vsel %vm882_vm7, %v873_v0, 0.0  ;;  %v929_v9 = vmul.f32 %v873_v0, %v873_v0 }
 0x4bb   :  { %v934_v10 = vsel %vm890_vm6, %v930_v2, 0.0  ;;  %v891_v11 = vsel %vm890_vm6, %v886_v8, 0.0  ;;  %v908_v12 = vmul.f32 %v886_v8, %v886_v8 }
 0x4bc   :  { %v913_v14 = vsel %vm890_vm6, %v909_v7, 0.0  ;;  %v893_v16 = vadd.f32 %v892_v5, %v891_v11  ;;  %v933_v17 = vsel %vm890_vm6, %v929_v9, 0.0 }
 0x4bd   :  { %v912_v18 = vsel %vm890_vm6, %v908_v12, 0.0  ;;  %v935_v19 = vadd.f32 %v934_v10, %v933_v17 }
 0x4be   :  { %v1175_v20 = vpop.f32.mrb[6].mxu0  ;;  %v914_v21 = vadd.f32 %v913_v14, %v912_v18 }
 0x4bf   :  { %v876_v22 = vmul.f32 0.125, %v1175_v20  ;;  %v864_v23 = vpop.f32.mrb[7].mxu0 }
 0x4c0   :  { %v875_v24 = vmul.f32 0.125, %v864_v23 }
 0x4c1   :  { %v889_v25 = vsel %vm885_vm8, %v876_v22, 0.0  ;;  %v932_v26 = vmul.f32 %v876_v22, %v876_v22 }
 0x4c2   :  { %v888_v27 = vsel %vm884_vm9, %v875_v24, 0.0  ;;  %v931_v28 = vmul.f32 %v875_v24, %v875_v24  ;;  %v911_v62 = vmul.f32 %v889_v25, %v889_v25  ;;  %v896_v33 = vsel %vm890_vm6, %v889_v25, 0.0 }
 0x4c3   :  { %v894_v29 = vsel %vm890_vm6, %v888_v27, 0.0  ;;  %v910_v30 = vmul.f32 %v888_v27, %v888_v27  ;;  %v938_v38 = vsel %vm890_vm6, %v932_v26, 0.0 }
 0x4c4   :  { %v936_v31 = vsel %vm890_vm6, %v931_v28, 0.0  ;;  %v895_v32 = vadd.f32 %v894_v29, %v893_v16  ;;  %v917_v39 = vsel %vm890_vm6, %v911_v62, 0.0 }
 0x4c5   :  { %v915_v36 = vsel %vm890_vm6, %v910_v30, 0.0  ;;  %v937_v34 = vadd.f32 %v936_v31, %v935_v19 }
 0x4c6   :  { %v897_v37 = vadd.f32 %v896_v33, %v895_v32  ;;  %v916_v35 = vadd.f32 %v915_v36, %v914_v21 }
 0x4c7   :  { %v939_v40 = vadd.f32 %v938_v38, %v937_v34 }
 0x4c8   :  { %898 = vadd.xlane.f32.xlu1 %v897_v37  ;;  %v918_v42 = vadd.f32 %v917_v39, %v916_v35 }
 0x4cc   :  { %919 = vadd.xlane.f32.xlu1 %v918_v42 }
 0x4d0   :  { %940 = vadd.xlane.f32.xlu1 %v939_v40 }
 0x4e1   :  { %959 = vrot.lane.b32.xlu1 %v1724_v41, %s1355_s5 }
 0x555   :  { %v899_v43 = vpop.xlane.xlu1 %898 }
 0x556   :  { %v900_v44 = vrot.slane %v899_v43, 4 }
 0x558   :  { %v901_v45 = vadd.f32 %v900_v44, %v899_v43 }
 0x559   :  { %v920_v46 = vpop.xlane.xlu1 %919 }
 0x55a   :  { %v902_v47 = vrot.slane %v901_v45, 2  ;;  %v921_v6 = vrot.slane %v920_v46, 4 }
 0x55c   :  { %v922_v48 = vadd.f32 %v921_v6, %v920_v46  ;;  %v903_v49 = vadd.f32 %v902_v47, %v901_v45 }
 0x55d   :  { %v941_v55 = vpop.xlane.xlu1 %940 }
 0x55e   :  { %v923_v50 = vrot.slane %v922_v48, 2  ;;  %v942_v51 = vrot.slane %v941_v55, 4  ;;  %v904_v52 = vrot.slane %v903_v49, 1 }
 0x560   :  { %v943_v53 = vadd.f32 %v942_v51, %v941_v55  ;;  %v905_v54 = vadd.f32 %v904_v52, %v903_v49  ;;  %v924_v56 = vadd.f32 %v923_v50, %v922_v48 }
 0x561   :  { %v960_v15 = vpop.permute.xlu1 %959 }
 0x562   :  { %v944_v41 = vrot.slane %v943_v53, 2  ;;  %v962_v57 = vsel %vm121_vm2, %v1702_v3, %v960_v15  ;;  %v963_v58 = vsel %vm775_vm3, %v960_v15, 0.0  ;;  %1276 = vpush %v905_v54  ;;  %v925_v59 = vrot.slane %v924_v56, 1 }
 0x563   :  { %965 = vst [vmem:[#allocation2 + $0x8] sm:$0xff] %v963_v58  ;;  %964 = vst [vmem:[#allocation2] sm:$0xff] %v962_v57 }
 0x564   :  { %v926_v60 = vadd.f32 %v925_v59, %v924_v56  ;;  %v945_v61 = vadd.f32 %v944_v41, %v943_v53 }
 0x565   :  { %1314 = shalt.err (!%p1311_p4)
}
 0x566   :  { %s1315_s27 = scalar_lea.hbm %s1780_s6, 256 }
 0x567   :  { %p1316_p5 = scmp.ne.s32.totalorder %s1780_s6, %s1315_s27  ;;  %p1319_p6 = scmp.lt.u32.totalorder %s1315_s27, %s1780_s6 }
 0x569   :  { %p1321_p7 = pnand %p1319_p6, %p1316_p5 }
 0x56b   :  { %1324 = shalt.err (!%p1321_p7)
}
 0x56c   :  { %983 = dma.vmem_to_hbm [thread:$0]  %s981_s25, 256, %s1780_s6, [#allocation3]   ;;  %1278 = vpush %v926_v60  ;;  %v946_v3 = vrot.slane %v945_v61, 1  ;;  %vm966_vm10 = vcmask 7168   ;;  %vm968_vm11 = vcmask 15360   ;;  %vm970_vm12 = vcmask 23552  }
 0x56d   :  { %s1273_s11 = spop %1272  ;;  %s1357_s6 = smov [#allocation4]   ;;  %vm972_vm13 = vcmask 24576  }
 0x56e   :  { %v947_v63 = vadd.f32 %v946_v3, %v945_v61  ;;  %s1275_s12 = spop %1274  ;;  %v701_v0 = vstv %s1273_s11  ;;  %s990_s16 = sshll.u32 %s1357_s6, 4  ;;  %s991_s16 = int_to_ptr.vmem [resolvable:$true] %s990_s16 }
 0x56f   :  { %v712_v1 = vstv %s1275_s12  ;;  %v714_v12 = vmul.f32 0.0024038462, %v701_v0  ;;  %s1325_s17 = scalar_lea.vmem %s991_s16, 16  ;;  %s1329_s18 = scalar_lea.vmem %s991_s16, 32 }
 0x570   :  { %1280 = vpush %v947_v63  ;;  %v713_v5 = vsub.f32 %v712_v1, %v701_v0  ;;  %p1326_p8 = scmp.ne.s32.totalorder %s991_s16, %s1325_s17  ;;  %p1330_p9 = scmp.lt.s32.totalorder %s991_s16, %s991_s16 }
 0x571   :  { %p1331_p10 = scmp.lt.s32.totalorder %s1329_s18, %s1325_s17 }
 0x572   :  { %v715_v10 = vmul.f32 0.00625, %v713_v5 }
 0x573   :  { %p1332_p11 = por %p1331_p10, %p1330_p9 }
 0x574   :  { %v956_v16 = vadd.f32 %v715_v10, %v714_v12  ;;  %v967_v18 = vsel %vm966_vm10, %v715_v10, %v714_v12 }
 0x575   :  { %p1333_p12 = pnand %p1332_p11, %p1326_p8 }
 0x593   :  { %s1277_s13 = spop %1276 }
 0x594   :  { %v907_v2 = vstv %s1277_s13 }
 0x595   :  { %v950_v7 = vmul.f32 2.0, %v907_v2 }
 0x59d   :  { %s1279_s14 = spop %1278 }
 0x59e   :  { %v928_v4 = vstv %s1279_s14 }
 0x59f   :  { %v951_v8 = vsub.f32 %v928_v4, %v950_v7 }
 0x5a1   :  { %s1281_s15 = spop %1280  ;;  %v952_v13 = vadd.f32 32.0, %v951_v8 }
 0x5a2   :  { %v949_v9 = vstv %s1281_s15 }
 0x5a3   :  { %v953_v11 = vsub.f32 %v949_v9, %v928_v4 }
 0x5a5   :  { %v954_v14 = vmul.f32 0.0051, %v953_v11 }
 0x5a7   :  { %v955_v17 = vadd.f32 %v954_v14, %v952_v13 }
 0x5a9   :  { %v957_v19 = vadd.f32 %v956_v16, %v955_v17  ;;  %v969_v20 = vsel %vm968_vm11, %v967_v18, %v955_v17 }
 0x5ab   :  { %v971_v21 = vsel %vm970_vm12, %v969_v20, %v957_v19 }
 0x5ac   :  { %973 = vst.msk [vmem:[#allocation4] sm:$0x1] %vm972_vm13, %v971_v21 }
 0x5ad   :  { %1336 = shalt.err (!%p1333_p12)
}
 0x5ae   :  { %s1337_s20 = scalar_lea.hbm %s1781_s7, 16 }
 0x5af   :  { %p1338_p13 = scmp.ne.s32.totalorder %s1781_s7, %s1337_s20  ;;  %p1341_p0 = scmp.lt.u32.totalorder %s1337_s20, %s1781_s7 }
 0x5b1   :  { %p1343_p1 = pnand %p1341_p0, %p1338_p13 }
 0x5b3   :  { %1346 = shalt.err (!%p1343_p1)
}
 0x5b4   :  { %993 = dma.vmem_to_hbm [thread:$0]  %s991_s16, 16, %s1781_s7, [#allocation5]  }
 0x5b5   :  { %1347 = dma.done.wait [#allocation3], 256  }
 0x5b6   :  { %1348 = vsyncadd [#allocation3], 4294967040 }
 0x5b7   :  { %1349 = dma.done.wait [#allocation5], 16  }
 0x5b8   :  { %1350 = vsyncadd [#allocation5], 4294967280 }
 0x5b9   :  { %1000 = vsyncpa [#allocation3], 1 }
 0x5ba   :  { %1001 = vsyncpa [#allocation5], 1 }

</bundles_post_ra>
